<compile_context>
chip_gen: v7x
topology: tpu7x:2x2x1
jax: 0.10.0
libtpu: 0.0.40
codegen_flags: <defaults>
</compile_context>

<pallas_src>
import functools

import jax
import jax.numpy as jnp
from jax.experimental import pallas as pl
from jax.experimental.pallas import tpu as pltpu

BN_EPS = 1e-5


# --------------------------------------------------------------------------
# Kernels
# --------------------------------------------------------------------------
def _encode_kernel(
    img_ref,        # [TB, D_img]            bf16
    x3_ref,         # [TB, 3*D_feat]         bf16   ([attr|name|descr])
    w_img_ref,      # [D_img, 4E]            bf16   (cols [0,E) = img linear)
    w_fe_ref,       # [3*D_feat, 3*D_bert]   bf16   (block-diag FE weights)
    b_fe_ref,       # [1, 3*D_bert]          f32
    w2_ref,         # [3*D_bert, 4E]         bf16   (shifted block-diag)
    b_all_ref,      # [1, 4E]                f32    (all four biases)
    pre_bn_ref,     # [TB, 4E]               f32    out: pre-BN product slab
    stats_ref,      # [2, 4E]                f32    out: row0=sum, row1=sumsq
):
    f32 = jnp.float32

    # Fused ProdFeatureEncoder (Linear + ReLU) for attr/name/descr in one matmul.
    h = jnp.dot(x3_ref[...], w_fe_ref[...], preferred_element_type=f32)
    h = jnp.maximum(h + b_fe_ref[...], 0.0).astype(jnp.bfloat16)

    # Accumulate directly into the lane-dense [TB, 4E] slab (no concat copy):
    #   cols [0,E)   <- img linear
    #   cols [E,4E)  <- attr/name/descr output linears (block-diag)
    slab = (
        jnp.dot(img_ref[...], w_img_ref[...], preferred_element_type=f32)
        + jnp.dot(h, w2_ref[...], preferred_element_type=f32)
        + b_all_ref[...]
    )
    pre_bn_ref[...] = slab.astype(pre_bn_ref.dtype)

    # Full-batch BN statistics: single-pass sum / sum-of-squares accumulator.
    @pl.when(pl.program_id(0) == 0)
    def _():
        stats_ref[...] = jnp.zeros_like(stats_ref)

    s = jnp.sum(slab, axis=0, keepdims=True)
    ss = jnp.sum(slab * slab, axis=0, keepdims=True)
    stats_ref[...] += jnp.concatenate([s, ss], axis=0)


def _bn_apply_kernel(pre_ref, stats_ref, gamma_ref, beta_ref, out_ref, *, inv_b):
    stats = stats_ref[...]
    mean = stats[0:1, :] * inv_b
    var = stats[1:2, :] * inv_b - mean * mean          # biased batch variance
    scale = gamma_ref[...] * jax.lax.rsqrt(var + BN_EPS)
    out_ref[...] = ((pre_ref[...] - mean) * scale + beta_ref[...]).astype(
        out_ref.dtype)


# --------------------------------------------------------------------------
# Host-side weight packing (fused / padded / bf16)
# --------------------------------------------------------------------------
def _pack_params(p):
    E = p["w_img"].shape[1]
    d_img = p["w_img"].shape[0]
    d_bert = p["w_fe_attr"].shape[1]
    C = 4 * E
    bf16 = jnp.bfloat16

    # img projection zero-padded to the full 4E output lanes (cols [0, E)).
    w_img_pad = jnp.zeros((d_img, C), jnp.float32).at[:, :E].set(p["w_img"])

    # Block-diagonal feature-encoder weight over [attr | name | descr].
    w_fe = jax.scipy.linalg.block_diag(
        p["w_fe_attr"], p["w_fe_name"], p["w_fe_descr"])
    b_fe = jnp.concatenate(
        [p["b_fe_attr"], p["b_fe_name"], p["b_fe_descr"]], axis=1)

    # Second-stage weight: block-diagonal, shifted one E-block right so output
    # lands in columns [E, 4E) of the product slab.
    w2 = jnp.zeros((3 * d_bert, C), jnp.float32)
    for k, w in enumerate((p["w_attr"], p["w_name"], p["w_descr"])):
        w2 = w2.at[k * d_bert:(k + 1) * d_bert,
                   (k + 1) * E:(k + 2) * E].set(w)

    b_all = jnp.concatenate(
        [p["b_img"], p["b_attr"], p["b_name"], p["b_descr"]], axis=1)

    return {
        "w_img": w_img_pad.astype(bf16),
        "w_fe": w_fe.astype(bf16),
        "b_fe": b_fe.astype(jnp.float32),      # added to the f32 accumulator
        "w2": w2.astype(bf16),
        "b_all": b_all.astype(jnp.float32),
    }


def _full_spec(arr):
    ndim = arr.ndim
    return pl.BlockSpec(arr.shape, lambda i: (0,) * ndim)


# --------------------------------------------------------------------------
# Forward wrapper
# --------------------------------------------------------------------------
def prod2vec_forward(img, name, descr, attr, params, *, batch_tile=128):
    """Fused Prod2Vec forward. Inputs are [B, feat] float32 arrays."""
    B = img.shape[0]
    E = params["w_img"].shape[1]
    C = 4 * E
    d_img = img.shape[1]
    d_feat = attr.shape[1]
    d_bert = params["w_fe_attr"].shape[1]

    tb = batch_tile
    if B % tb != 0:
        tb = B  # TODO(synk): pad the batch for ragged batch sizes.

    packed = _pack_params(params)

    # Free XLA concat of the three text-like inputs -> one streamed DMA operand.
    x3 = jnp.concatenate([attr, name, descr], axis=1).astype(jnp.bfloat16)
    img_bf16 = img.astype(jnp.bfloat16)

    grid = (B // tb,)

    flops = 2 * B * (3 * d_feat * 3 * d_bert + d_img * C + 3 * d_bert * C)
    bytes_accessed = (
        img_bf16.size * 2 + x3.size * 2
        + sum(int(v.size) * v.dtype.itemsize for v in packed.values())
        + B * C * 4 + 2 * C * 4)
    cost1 = pl.CostEstimate(flops=int(flops), transcendentals=0,
                            bytes_accessed=int(bytes_accessed))

    # Pass 1: encoders + pre-BN slab + batch statistics.
    pre_bn, stats = pl.pallas_call(
        _encode_kernel,
        out_shape=(
            jax.ShapeDtypeStruct((B, C), jnp.float32),   # pre-BN product slab
            jax.ShapeDtypeStruct((2, C), jnp.float32),   # [sum; sumsq]
        ),
        grid=grid,
        in_specs=[
            pl.BlockSpec((tb, d_img), lambda i: (i, 0)),
            pl.BlockSpec((tb, 3 * d_feat), lambda i: (i, 0)),
            _full_spec(packed["w_img"]),
            _full_spec(packed["w_fe"]),
            _full_spec(packed["b_fe"]),
            _full_spec(packed["w2"]),
            _full_spec(packed["b_all"]),
        ],
        out_specs=(
            pl.BlockSpec((tb, C), lambda i: (i, 0)),
            pl.BlockSpec((2, C), lambda i: (0, 0)),      # resident accumulator
        ),
        compiler_params=pltpu.CompilerParams(
            dimension_semantics=("arbitrary",),          # stats accumulate over batch
            vmem_limit_bytes=32 * 1024 * 1024),
        cost_estimate=cost1,
    )(img_bf16, x3, packed["w_img"], packed["w_fe"], packed["b_fe"],
      packed["w2"], packed["b_all"])

    # Pass 2: apply BatchNorm with full-batch statistics.
    product = pl.pallas_call(
        functools.partial(_bn_apply_kernel, inv_b=1.0 / B),
        out_shape=jax.ShapeDtypeStruct((B, C), jnp.float32),
        grid=grid,
        in_specs=[
            pl.BlockSpec((tb, C), lambda i: (i, 0)),
            _full_spec(stats),
            _full_spec(params["bn_gamma"]),
            _full_spec(params["bn_beta"]),
        ],
        out_specs=pl.BlockSpec((tb, C), lambda i: (i, 0)),
        compiler_params=pltpu.CompilerParams(
            dimension_semantics=("parallel",),
            vmem_limit_bytes=32 * 1024 * 1024),
    )(pre_bn, stats, params["bn_gamma"], params["bn_beta"])

    # Per-modality embeddings are slices of the lane-dense pre-BN slab.
    return {
        "img": pre_bn[:, :E],
        "attr": pre_bn[:, E:2 * E],
        "name": pre_bn[:, 2 * E:3 * E],
        "descr": pre_bn[:, 3 * E:],
        "product": product,
    }


# --------------------------------------------------------------------------
# Parameters & pure-JAX reference
# --------------------------------------------------------------------------
def _uniform_init(key, shape, fan_in):
    bound = 1.0 / jnp.sqrt(jnp.float32(fan_in))
    return jax.random.uniform(key, shape, jnp.float32, -bound, bound)


def make_params(key, img_embedding_size, feature_size, bert_output_size,
                embedding_size):
    keys = jax.random.split(key, 20)
    E, d_img, d_feat, d_bert = (
        embedding_size, img_embedding_size, feature_size, bert_output_size)

    def fe_and_linear(k0, k1, k2, k3):
        return (
            _uniform_init(k0, (d_feat, d_bert), d_feat),
            _uniform_init(k1, (1, d_bert), d_feat),
            _uniform_init(k2, (d_bert, E), d_bert),
            _uniform_init(k3, (1, E), d_bert),
        )

    w_fe_attr, b_fe_attr, w_attr, b_attr = fe_and_linear(*keys[2:6])
    w_fe_name, b_fe_name, w_name, b_name = fe_and_linear(*keys[6:10])
    w_fe_descr, b_fe_descr, w_descr, b_descr = fe_and_linear(*keys[10:14])

    return {
        "w_img": _uniform_init(keys[0], (d_img, E), d_img),
        "b_img": _uniform_init(keys[1], (1, E), d_img),
        "w_fe_attr": w_fe_attr, "b_fe_attr": b_fe_attr,
        "w_attr": w_attr, "b_attr": b_attr,
        "w_fe_name": w_fe_name, "b_fe_name": b_fe_name,
        "w_name": w_name, "b_name": b_name,
        "w_fe_descr": w_fe_descr, "b_fe_descr": b_fe_descr,
        "w_descr": w_descr, "b_descr": b_descr,
        "bn_gamma": jnp.ones((1, 4 * E), jnp.float32),
        "bn_beta": jnp.zeros((1, 4 * E), jnp.float32),
    }


def _reference_forward(img, name, descr, attr, params):
    """Pure-JAX reference mimicking the kernel math (bf16 matmuls, f32 BN)."""
    bf16 = jnp.bfloat16

    def lin(x, w, b):
        return jnp.dot(x.astype(bf16), w.astype(bf16),
                       preferred_element_type=jnp.float32) + b

    def fe(x, wf, bf, w, b):
        h = jnp.maximum(lin(x, wf, bf), 0.0).astype(bf16)
        return jnp.dot(h, w.astype(bf16),
                       preferred_element_type=jnp.float32) + b

    img_e = lin(img, params["w_img"], params["b_img"])
    attr_e = fe(attr, params["w_fe_attr"], params["b_fe_attr"],
                params["w_attr"], params["b_attr"])
    name_e = fe(name, params["w_fe_name"], params["b_fe_name"],
                params["w_name"], params["b_name"])
    descr_e = fe(descr, params["w_fe_descr"], params["b_fe_descr"],
                 params["w_descr"], params["b_descr"])
    cat = jnp.concatenate([img_e, attr_e, name_e, descr_e], axis=1)
    mean = jnp.mean(cat, axis=0, keepdims=True)
    var = jnp.mean((cat - mean) ** 2, axis=0, keepdims=True)
    prod = (cat - mean) * jax.lax.rsqrt(var + BN_EPS) * params["bn_gamma"] \
        + params["bn_beta"]
    return img_e, attr_e, name_e, descr_e, prod


if __name__ == "__main__":
    B = 64                      # batch (tiled into 4 grid steps of 16)
    IMG_EMB_SIZE = 16           # config.img_embedding_size
    FEATURE_SIZE = 24           # raw name/descr/attr feature width
    BERT_OUTPUT_SIZE = 64       # config.bert_output_size
    EMBEDDING_SIZE = 32         # config.embedding_size -> 4E = 128 (lane-dense)

    root = jax.random.PRNGKey(0)
    k_params, k_img, k_name, k_descr, k_attr = jax.random.split(root, 5)

    params = make_params(k_params, IMG_EMB_SIZE, FEATURE_SIZE,
                         BERT_OUTPUT_SIZE, EMBEDDING_SIZE)

    img = jax.random.normal(k_img, (B, IMG_EMB_SIZE), jnp.float32)
    name = jax.random.normal(k_name, (B, FEATURE_SIZE), jnp.float32)
    descr = jax.random.normal(k_descr, (B, FEATURE_SIZE), jnp.float32)
    attr = jax.random.normal(k_attr, (B, FEATURE_SIZE), jnp.float32)

    out = jax.block_until_ready(
        prod2vec_forward(img, name, descr, attr, params, batch_tile=16))

    ref = _reference_forward(img, name, descr, attr, params)
    for key_name, want in zip(("img", "attr", "name", "descr", "product"), ref):
        got = out[key_name]
        assert got.shape == want.shape, (key_name, got.shape, want.shape)
        assert jnp.allclose(got, want, atol=1e-2, rtol=1e-2), \
            f"mismatch vs reference: {key_name}"

    print("KERNEL_OK")
</pallas_src>

<mosaic_0001>
module attributes {stable_mosaic.version = 11 : i64} {
  func.func @_encode_kernel(%arg0: i32, %arg1: memref<16x16xbf16, #tpu.memory_space<vmem>>, %arg2: memref<16x72xbf16, #tpu.memory_space<vmem>>, %arg3: memref<16x128xbf16, #tpu.memory_space<vmem>>, %arg4: memref<72x192xbf16, #tpu.memory_space<vmem>>, %arg5: memref<1x192xf32, #tpu.memory_space<vmem>>, %arg6: memref<192x128xbf16, #tpu.memory_space<vmem>>, %arg7: memref<1x128xf32, #tpu.memory_space<vmem>>, %arg8: memref<16x128xf32, #tpu.memory_space<vmem>>, %arg9: memref<2x128xf32, #tpu.memory_space<vmem>>) attributes {dimension_semantics = [#tpu.dimension_semantics<arbitrary>], iteration_bounds = array<i64: 4>, scalar_prefetch = 0 : i64, scratch_operands = 0 : i64, tpu.core_type = #tpu.core_type<tc>, window_params = [{transform_indices = @transform_0, window_bounds = array<i64: 16, 16>}, {transform_indices = @transform_1, window_bounds = array<i64: 16, 72>}, {pipeline_mode = #tpu.pipeline_mode<synchronous>, transform_indices = @transform_2, window_bounds = array<i64: 16, 128>}, {pipeline_mode = #tpu.pipeline_mode<synchronous>, transform_indices = @transform_3, window_bounds = array<i64: 72, 192>}, {pipeline_mode = #tpu.pipeline_mode<synchronous>, transform_indices = @transform_4, window_bounds = array<i64: 1, 192>}, {pipeline_mode = #tpu.pipeline_mode<synchronous>, transform_indices = @transform_5, window_bounds = array<i64: 192, 128>}, {pipeline_mode = #tpu.pipeline_mode<synchronous>, transform_indices = @transform_6, window_bounds = array<i64: 1, 128>}, {transform_indices = @transform_7, window_bounds = array<i64: 16, 128>}, {pipeline_mode = #tpu.pipeline_mode<synchronous>, transform_indices = @transform_8, window_bounds = array<i64: 2, 128>}]} {
    %c0 = arith.constant 0 : index
    %c0_0 = arith.constant 0 : index
    %0 = vector.load %arg2[%c0, %c0_0] : memref<16x72xbf16, #tpu.memory_space<vmem>>, vector<16x72xbf16>
    %c0_1 = arith.constant 0 : index
    %c0_2 = arith.constant 0 : index
    %1 = vector.load %arg4[%c0_1, %c0_2] : memref<72x192xbf16, #tpu.memory_space<vmem>>, vector<72x192xbf16>
    %cst = arith.constant dense<0.000000e+00> : vector<16x192xf32>
    %2 = tpu.matmul %0, %1, %cst {dimension_numbers = #tpu.dot_dimension_numbers<[1], [0], [0], [1], [0, 0, 1, 1], [], []>} : vector<16x72xbf16>, vector<72x192xbf16>, vector<16x192xf32> -> vector<16x192xf32>
    %c0_3 = arith.constant 0 : index
    %c0_4 = arith.constant 0 : index
    %3 = vector.load %arg5[%c0_3, %c0_4] : memref<1x192xf32, #tpu.memory_space<vmem>>, vector<1x192xf32>
    %4 = vector.broadcast %3 : vector<1x192xf32> to vector<16x192xf32>
    %5 = arith.addf %2, %4 : vector<16x192xf32>
    %cst_5 = arith.constant 0.000000e+00 : f32
    %6 = vector.broadcast %cst_5 : f32 to vector<16x192xf32>
    %7 = arith.maximumf %5, %6 : vector<16x192xf32>
    %8 = arith.truncf %7 : vector<16x192xf32> to vector<16x192xbf16>
    %c0_6 = arith.constant 0 : index
    %c0_7 = arith.constant 0 : index
    %9 = vector.load %arg1[%c0_6, %c0_7] : memref<16x16xbf16, #tpu.memory_space<vmem>>, vector<16x16xbf16>
    %c0_8 = arith.constant 0 : index
    %c0_9 = arith.constant 0 : index
    %10 = vector.load %arg3[%c0_8, %c0_9] : memref<16x128xbf16, #tpu.memory_space<vmem>>, vector<16x128xbf16>
    %cst_10 = arith.constant dense<0.000000e+00> : vector<16x128xf32>
    %11 = tpu.matmul %9, %10, %cst_10 {dimension_numbers = #tpu.dot_dimension_numbers<[1], [0], [0], [1], [0, 0, 1, 1], [], []>} : vector<16x16xbf16>, vector<16x128xbf16>, vector<16x128xf32> -> vector<16x128xf32>
    %c0_11 = arith.constant 0 : index
    %c0_12 = arith.constant 0 : index
    %12 = vector.load %arg6[%c0_11, %c0_12] : memref<192x128xbf16, #tpu.memory_space<vmem>>, vector<192x128xbf16>
    %cst_13 = arith.constant dense<0.000000e+00> : vector<16x128xf32>
    %13 = tpu.matmul %8, %12, %cst_13 {dimension_numbers = #tpu.dot_dimension_numbers<[1], [0], [0], [1], [0, 0, 1, 1], [], []>} : vector<16x192xbf16>, vector<192x128xbf16>, vector<16x128xf32> -> vector<16x128xf32>
    %14 = arith.addf %11, %13 : vector<16x128xf32>
    %c0_14 = arith.constant 0 : index
    %c0_15 = arith.constant 0 : index
    %15 = vector.load %arg7[%c0_14, %c0_15] : memref<1x128xf32, #tpu.memory_space<vmem>>, vector<1x128xf32>
    %16 = vector.broadcast %15 : vector<1x128xf32> to vector<16x128xf32>
    %17 = arith.addf %14, %16 : vector<16x128xf32>
    %c0_16 = arith.constant 0 : index
    %c0_17 = arith.constant 0 : index
    %18 = vector.load %arg8[%c0_16, %c0_17] : memref<16x128xf32, #tpu.memory_space<vmem>>, vector<16x128xf32>
    tpu.vector_store %arg8[%c0_16, %c0_17], %17 {strides = array<i32>} : memref<16x128xf32, #tpu.memory_space<vmem>>, vector<16x128xf32>,
    %c0_i32 = arith.constant 0 : i32
    %19 = arith.cmpi eq, %arg0, %c0_i32 : i32
    %20 = arith.extui %19 : i1 to i32
    %c0_i32_18 = arith.constant 0 : i32
    %21 = arith.cmpi ne, %20, %c0_i32_18 : i32
    scf.if %21 {
      %cst_25 = arith.constant 0.000000e+00 : f32
      %31 = vector.broadcast %cst_25 : f32 to vector<2x128xf32>
      %c0_26 = arith.constant 0 : index
      %c0_27 = arith.constant 0 : index
      %32 = vector.load %arg9[%c0_26, %c0_27] : memref<2x128xf32, #tpu.memory_space<vmem>>, vector<2x128xf32>
      tpu.vector_store %arg9[%c0_26, %c0_27], %31 {strides = array<i32>} : memref<2x128xf32, #tpu.memory_space<vmem>>, vector<2x128xf32>,
    } else {
    }
    %cst_19 = arith.constant dense<0.000000e+00> : vector<128xf32>
    %22 = vector.multi_reduction <add>, %17, %cst_19 [0] : vector<16x128xf32> to vector<128xf32>
    %23 = vector.shape_cast %22 : vector<128xf32> to vector<1x128xf32>
    %24 = arith.mulf %17, %17 : vector<16x128xf32>
    %cst_20 = arith.constant dense<0.000000e+00> : vector<128xf32>
    %25 = vector.multi_reduction <add>, %24, %cst_20 [0] : vector<16x128xf32> to vector<128xf32>
    %26 = vector.shape_cast %25 : vector<128xf32> to vector<1x128xf32>
    %c0_21 = arith.constant 0 : index
    %c0_22 = arith.constant 0 : index
    %27 = vector.load %arg9[%c0_21, %c0_22] : memref<2x128xf32, #tpu.memory_space<vmem>>, vector<2x128xf32>
    %28 = tpu.concatenate %23, %26 in 0 : vector<1x128xf32>, vector<1x128xf32> -> vector<2x128xf32>
    %29 = arith.addf %27, %28 : vector<2x128xf32>
    %c0_23 = arith.constant 0 : index
    %c0_24 = arith.constant 0 : index
    %30 = vector.load %arg9[%c0_23, %c0_24] : memref<2x128xf32, #tpu.memory_space<vmem>>, vector<2x128xf32>
    tpu.vector_store %arg9[%c0_23, %c0_24], %29 {strides = array<i32>} : memref<2x128xf32, #tpu.memory_space<vmem>>, vector<2x128xf32>,
    return
  }
  func.func @transform_0(%arg0: i32) -> (i32, i32) {
    %c0_i32 = arith.constant 0 : i32
    %c0_i32_0 = arith.constant 0 : i32
    return %arg0, %c0_i32 : i32, i32
  }
  func.func @transform_1(%arg0: i32) -> (i32, i32) {
    %c0_i32 = arith.constant 0 : i32
    %c0_i32_0 = arith.constant 0 : i32
    return %arg0, %c0_i32 : i32, i32
  }
  func.func @transform_2(%arg0: i32) -> (i32, i32) {
    %c0_i32 = arith.constant 0 : i32
    %c0_i32_0 = arith.constant 0 : i32
    %c0_i32_1 = arith.constant 0 : i32
    return %c0_i32, %c0_i32_0 : i32, i32
  }
  func.func @transform_3(%arg0: i32) -> (i32, i32) {
    %c0_i32 = arith.constant 0 : i32
    %c0_i32_0 = arith.constant 0 : i32
    %c0_i32_1 = arith.constant 0 : i32
    return %c0_i32, %c0_i32_0 : i32, i32
  }
  func.func @transform_4(%arg0: i32) -> (i32, i32) {
    %c0_i32 = arith.constant 0 : i32
    %c0_i32_0 = arith.constant 0 : i32
    %c0_i32_1 = arith.constant 0 : i32
    return %c0_i32, %c0_i32_0 : i32, i32
  }
  func.func @transform_5(%arg0: i32) -> (i32, i32) {
    %c0_i32 = arith.constant 0 : i32
    %c0_i32_0 = arith.constant 0 : i32
    %c0_i32_1 = arith.constant 0 : i32
    return %c0_i32, %c0_i32_0 : i32, i32
  }
  func.func @transform_6(%arg0: i32) -> (i32, i32) {
    %c0_i32 = arith.constant 0 : i32
    %c0_i32_0 = arith.constant 0 : i32
    %c0_i32_1 = arith.constant 0 : i32
    return %c0_i32, %c0_i32_0 : i32, i32
  }
  func.func @transform_7(%arg0: i32) -> (i32, i32) {
    %c0_i32 = arith.constant 0 : i32
    %c0_i32_0 = arith.constant 0 : i32
    return %arg0, %c0_i32 : i32, i32
  }
  func.func @transform_8(%arg0: i32) -> (i32, i32) {
    %c0_i32 = arith.constant 0 : i32
    %c0_i32_0 = arith.constant 0 : i32
    %c0_i32_1 = arith.constant 0 : i32
    return %c0_i32, %c0_i32_0 : i32, i32
  }
}

</mosaic_0001>

<bundles_post_ra>
// kernel: tpu_custom_call.1
= control target key start
LH: loop header
LB: loop body
LE: loop exit
PB: predicated region body
PF: predicated region fallthrough
CT: control target
= control target key end

     0   :  { %14 = vsyncpa [#allocation3], 0  ;;  %s1474_s0 = inlined_call_operand.vmem [shape: bf16[64,16], index: 0, kind: input, shape index: {}]   ;;  %s1475_s1 = inlined_call_operand.vmem [shape: bf16[64,72], index: 1, kind: input, shape index: {}]   ;;  %s1476_s2 = inlined_call_operand.vmem [shape: bf16[16,128], index: 2, kind: input, shape index: {}]   ;;  %s1477_s3 = inlined_call_operand.hbm [shape: bf16[72,192], index: 3, kind: input, shape index: {}]   ;;  %s1478_s4 = inlined_call_operand.vmem [shape: f32[1,192], index: 4, kind: input, shape index: {}]   ;;  %s1479_s5 = inlined_call_operand.hbm [shape: bf16[192,128], index: 5, kind: input, shape index: {}]   ;;  %s1480_s6 = inlined_call_operand.vmem [shape: f32[1,128], index: 6, kind: input, shape index: {}]   ;;  %s1481_s7 = inlined_call_operand.hbm [shape: f32[64,128], index: 7, kind: output, shape index: {0}]   ;;  %s1482_s8 = inlined_call_operand.hbm [shape: f32[2,128], index: 8, kind: output, shape index: {1}]  }
   0x1   :  { %15 = vsyncpa [#allocation6], 0 }
   0x2   :  { %16 = vsyncpa [#allocation4], 0 }
   0x3   :  { %18 = vsyncpa [#allocation4 + $0x1], 0 }
   0x4   :  { %19 = vsyncpa [#allocation9], 0  ;;  %s1245_s27 = smov 0   ;;  %s1247_s28 = smov 0  }
   0x5   :  { %s1249_s29 = smov 0   ;;  %s1251_s30 = smov 0  }
   0x6 LB: > { %1488 = sst [smem:[#allocation14_spill]] %s1180_s29  ;;  %s1266_s9 = sadd.s32 4294967295, %s1184_s30   ;;  %s1184_s30 = sphi %s1251_s30, %s1511_s30   ;;  %s1180_s29 = sphi %s1249_s29, %s1508_s29   ;;  %s1176_s28 = sphi %s1247_s28, %s1510_s28   ;;  %s1172_s27 = sphi %s1245_s27, %s1509_s27  }
   0x7   : > { %s862_s10 = sadd.s32 4294967294, %s1184_s30   ;;  %s1270_s11 = sadd.s32 1, %s1184_s30  }
   0x8   : > { %s189_s12 = sadd.s32 1, %s1180_s29  ;;  %s186_s13 = ssub.s32 %s1184_s30, %s1270_s11 }
   0x9   : > { %p199_p0 = scmp.ne.s32.totalorder %s1180_s29, %s1176_s28  ;;  %p187_p1 = scmp.eq.s32.totalorder %s186_s13, 0 }
   0xa   : > { %p1483_p2 = scmp.eq.s32.totalorder %s1266_s9, 3  ;;  %p205_p3 = scmp.ne.s32.totalorder %s1176_s28, %s1172_s27 }
   0xb   : > { %p206_p4 = scmp.eq.s32.totalorder %s862_s10, 3  ;;  %p863_p7 = scmp.ge.s32.totalorder %s1184_s30, 1 }
   0xc   : > { %s1281_s14 = scalar_select %p187_p1, %s1180_s29, %s189_s12  }
   0xd   : > { %p1285_p5 = por %p1483_p2, %p199_p0  ;;  %p1289_p6 = por %p206_p4, %p205_p3 }
   0xe   : > { %1489 = sst [smem:[#allocation15_spill]] %s1281_s14  ;;  %p234_p8 = scmp.lt.s32.totalorder %s1184_s30, 5 }
   0xf   : > { %s1490_s15 = scalar_select %p1285_p5, 1, 0 }
  0x10   : > { %s1491_s16 = scalar_select %p1289_p6, 1, 0 }
  0x11   : > { %p1484_p10 = scmp.eq.s32.totalorder %s1266_s9, 0  ;;  %p1297_p11 = pnand %p863_p7, %p234_p8 }
  0x12   : > { %s1186_s18 = smov [#allocation2]   ;;  %s1187_s21 = smov [#allocation5]  }
  0x13   : > { %s1492_s17 = scalar_select %p1297_p11, 1, 0 }
  0x14   : > { %s249_s19 = sshll.u32 %s1186_s18, 4  ;;  %p936_p12 = pneg %p1297_p11  ;;  %s250_s19 = int_to_ptr.vmem [resolvable:$true] %s249_s19 }
  0x15   : > { %s265_s22 = sshll.u32 %s1187_s21, 4  ;;  %s1028_s25 = scalar_lea.hbm %s1477_s3, 1152  ;;  %s1309_s22 = int_to_ptr.vmem [resolvable:$true] %s265_s22 }
  0x16   : > { %p1305_p13 = pnand %p1484_p10, %p936_p12  ;;  %p1029_p0 = scmp.ne.s32.totalorder %s1477_s3, %s1028_s25 }
  0x17   : > { %p1035_p7 = scmp.lt.u32.totalorder %s1028_s25, %s1477_s3 }
  0x18   : > { %p1030_p1 = pneg %p1305_p13 }
  0x1a   : > { %p1031_p3 = pnand %p1030_p1, %p1029_p0 }
  0x1c   : > { %p1032_p4 = pneg %p1031_p3 }
  0x1e   : > { %p1037_p8 = pnand %p1035_p7, %p1032_p4 }
  0x20   : > { %1040 = shalt.err (!%p1037_p8)
}
  0x21   : > { %s1041_s18 = scalar_lea.vmem %s250_s19, 1152  ;;  %p1049_p10 = scmp.lt.s32.totalorder %s250_s19, %s250_s19 }
  0x22   : > { %p1042_p12 = scmp.ne.s32.totalorder %s250_s19, %s1041_s18  ;;  %p1050_p6 = scmp.lt.s32.totalorder %s1041_s18, %s1041_s18 }
  0x24   : > { %p1044_p2 = pnand %p1042_p12, %p1030_p1  ;;  %p1051_p5 = por %p1050_p6, %p1049_p10 }
  0x26   : > { %p1045_p9 = pneg %p1044_p2 }
  0x28   : > { %p1052_p11 = pnand %p1051_p5, %p1045_p9 }
  0x2a   : > { %1055 = shalt.err (!%p1052_p11)
}
  0x2b   : > { %s1188_s21 = smov 128   ;;  %s1189_s23 = smov 8  }
  0x2c   : > { %939 = dma.hbm_to_vmem [thread:$0]  (!%p1305_p13), %s1477_s3, 1152, %s250_s19, [#allocation3], %s1188_s21, %s1188_s21, %s1189_s23  }
  0x2d   : > { %s1056_s12 = scalar_lea.hbm %s1479_s5, 1536 }
  0x2e   : > { %p1057_p2 = scmp.ne.s32.totalorder %s1479_s5, %s1056_s12  ;;  %p1063_p9 = scmp.lt.u32.totalorder %s1056_s12, %s1479_s5 }
  0x30   : > { %p1059_p5 = pnand %p1057_p2, %p1030_p1 }
  0x32   : > { %p1060_p6 = pneg %p1059_p5 }
  0x34   : > { %p1065_p10 = pnand %p1063_p9, %p1060_p6 }
  0x36   : > { %1068 = shalt.err (!%p1065_p10)
}
  0x37   : > { %s1069_s19 = scalar_lea.vmem %s1309_s22, 1536  ;;  %p1077_p4 = scmp.lt.s32.totalorder %s1309_s22, %s1309_s22 }
  0x38   : > { %p1070_p11 = scmp.ne.s32.totalorder %s1309_s22, %s1069_s19  ;;  %p1078_p7 = scmp.lt.s32.totalorder %s1069_s19, %s1069_s19 }
  0x3a   : > { %p1072_p0 = pnand %p1070_p11, %p1030_p1  ;;  %p1079_p8 = por %p1078_p7, %p1077_p4 }
  0x3c   : > { %p1073_p3 = pneg %p1072_p0 }
  0x3e   : > { %p1080_p12 = pnand %p1079_p8, %p1073_p3 }
  0x40   : > { %1083 = shalt.err (!%p1080_p12)
}
  0x41   : > { %s1190_s29 = smov 64   ;;  %s1191_s14 = smov 4  }
  0x42   : > { %942 = dma.hbm_to_vmem [thread:$0]  (!%p1305_p13), %s1479_s5, 1536, %s1309_s22, [#allocation6], %s1190_s29, %s1190_s29, %s1191_s14  }
  0x43   : > { %p1494_p2 = scmp.ne.s32.totalorder %s1492_s17, 0 }
  0x44   : > { %p1495_p1 = scmp.eq.s32.totalorder (!%p1494_p2), %s1266_s9, 0 }
  0x45   : > { %302 = sbr.rel (%p1494_p2) target bundleno = 599 (0x257), region = 48 }
  0x4c   : > { %1155 = dma.done.wait (%p1495_p1), [#allocation3], 1152   ;;  %p1496_p5 = pmov %p1495_p1 }
  0x4d   : > { %p1497_p6 = pmov %p1495_p1 }
  0x4e   : > { %1157 = vsyncadd (%p1496_p5), [#allocation3], 4294966144 }
  0x4f   : > { %1159 = dma.done.wait (%p1497_p6), [#allocation6], 1536   ;;  %p1498_p9 = pmov %p1495_p1 }
  0x50   : > { %s871_s20 = sshll.u32 %s1266_s9, 1  ;;  %v1192_v0 = vmov 0   ;;  %v999_v1 = vld [vmem:[#allocation2 + $0x4] ss:$8 sps:$4 sm:$0xff]   ;;  %v1001_v2 = vld [vmem:[#allocation2] ss:$8 sps:$4 sm:$0xff]   ;;  %v372_v29 = vlaneseq }
  0x51   : > { %1161 = vsyncadd (%p1498_p9), [#allocation6], 4294965760  ;;  %475 = vmatprep.mubr.bf16.mxu0 %v1192_v0  ;;  %p346_p13 = scmp.lt.s32.totalorder %s871_s20, 7  ;;  %596 = vmatprep.subr.bf16.mxu1 %v1192_v0  ;;  %v1002_v3 = vld [vmem:[#allocation2 + $0x14] ss:$8 sps:$4 sm:$0xff]   ;;  %v1014_v8 = vld [vmem:[#allocation5] sm:$0xff]  }
  0x52   : > { %443 = vmatprep.subr.bf16.mxu0 %v999_v1  ;;  %v1004_v4 = vld [vmem:[#allocation2 + $0x10] ss:$8 sps:$4 sm:$0xff]   ;;  %v1005_v5 = vld [vmem:[#allocation2 + $0x24] ss:$8 sps:$4 sm:$0xff]   ;;  %v1007_v6 = vld [vmem:[#allocation2 + $0x20] ss:$8 sps:$4 sm:$0xff]   ;;  %597 = vmatpush1.bf16.msra.mxu1 %v1014_v8 }
  0x53   : > { %s1513_s20 = smov (!%p346_p13, %s871_s20), 7  ;;  %444 = vmatpush1.bf16.msra.mxu0 %v1001_v2  ;;  %v1008_v7 = vld [vmem:[#allocation2 + $0x34] ss:$8 sps:$4 sm:$0xff]   ;;  %v369_v9 = vld [vmem:[#allocation2 + $0x40] sm:$0xff]  ;;  %v1010_v11 = vld [vmem:[#allocation2 + $0x30] ss:$8 sps:$4 sm:$0xff]   ;;  %598 = vmatprep.subr.bf16.mxu1 %v1192_v0 }
  0x54   : > { %s872_s17 = sshll.u32 %s1513_s20, 2  ;;  %445 = vmatprep.subr.bf16.mxu0 %v1002_v3  ;;  %v1015_v10 = vld [vmem:[#allocation5 + $0x8] sm:$0xff]   ;;  %v885_v12 = vcombine.high %v369_v9, %v369_v9  ;;  %v884_v13 = vcombine.low %v369_v9, %v369_v9  ;;  %vm436_vm0 = vcmask 1043456   ;;  %v1016_v14 = vld [vmem:[#allocation5 + $0x10] sm:$0xff]   ;;  %v1017_v17 = vld [vmem:[#allocation5 + $0x18] sm:$0xff]   ;;  %vm432_vm1 = vcmask 588800  }
  0x55   : > { %s355_s25 = scalar_lea.vmem %s1475_s1, %s872_s17  ;;  %s1377_s12 = scalar_lea.vmem %s1474_s0, %s872_s17  ;;  %v1018_v18 = vld [vmem:[#allocation5 + $0x20] sm:$0xff]   ;;  %v1019_v19 = vld [vmem:[#allocation5 + $0x28] sm:$0xff]   ;;  %v1020_v20 = vld [vmem:[#allocation5 + $0x30] sm:$0xff]   ;;  %v1193_v26 = vmov 0.0   ;;  %vm1194_vm2 = vmmov 0   ;;  %vm648_vm3 = vcmask 130048  }
  0x56   : > { %599 = vmatpush1.bf16.msra.mxu1 %v1015_v10  ;;  %v438_v15 = vsel %vm436_vm0, %v884_v13, 0  ;;  %v1013_v16 = vld [vmem:[%s355_s25] sm:$0xff]   ;;  %v1022_v22 = vld [vmem:[#allocation5 + $0x40] sm:$0xff]   ;;  %v1023_v23 = vld [vmem:[#allocation5 + $0x48] sm:$0xff]   ;;  %v373_v30 = vshrl.u32 %v372_v29, 7  ;;  %vm592_vm4 = vcmask 523264  }
  0x57   : > { %446 = vmatpush1.bf16.msra.mxu0 %v1004_v4  ;;  %600 = vmatprep.subr.bf16.mxu1 %v1192_v0  ;;  %v1021_v21 = vld [vmem:[#allocation5 + $0x38] sm:$0xff]   ;;  %v1025_v24 = vld [vmem:[#allocation5 + $0x50] sm:$0xff]   ;;  %s340_s14 = sand.u32 1, %s1176_s28   ;;  %p1499_p10 = scmp.ne.s32.totalorder %s1266_s9, 0 }
  0x58   : > { %447 = vmatprep.subr.bf16.mxu0 %v1005_v5  ;;  %v1024_v25 = vld [vmem:[%s1476_s2] sm:$0xff]   ;;  %v374_v31 = vsub.s32 0, %v373_v30  ;;  %v378_v33 = vsub.s32 1, %v373_v30  ;;  %s870_s21 = sshll.u32 %s340_s14, 4  ;;  %v1195_v63 = vmov (!%p1499_p10), 0.0  }
  0x59   : > { %v1026_v27 = vld [vmem:[#allocation5 + $0x58] sm:$0xff]   ;;  %s342_s17 = scalar_lea.vmem [#allocation7], %s870_s21  ;;  %708 = vst [vmem:[#allocation8] sm:$0x3] (!%p1499_p10), %v1195_v63 }
  0x5a   : > { %601 = vmatpush1.bf16.msra.mxu1 %v1016_v14  ;;  %v1027_v28 = vld [vmem:[%s1377_s12] sm:$0xff]  }
  0x5b   : > { %448 = vmatpush1.bf16.msra.mxu0 %v1007_v6  ;;  %602 = vmatprep.subr.bf16.mxu1 %v1192_v0  ;;  %v370_v32 = vld [vmem:[%s1478_s4] sm:$0x3] }
  0x5c   : > { %449 = vmatprep.subr.bf16.mxu0 %v1008_v7  ;;  %v375_v34 = vrot.slane %v370_v32, %v374_v31  ;;  %v379_v35 = vrot.slane %v370_v32, %v378_v33  ;;  %v904_v55 = vld [vmem:[%s1480_s6] ss:$0 sm:$0xff] }
  0x5e   : > { %603 = vmatpush1.bf16.msra.mxu1 %v1017_v17 }
  0x5f   : > { %450 = vmatpush1.bf16.msra.mxu0 %v1010_v11  ;;  %604 = vmatprep.subr.bf16.mxu1 %v1192_v0 }
  0x60   : > { %886 = vmatprep.subr.msk.bf16.mxu0 %vm436_vm0, %v885_v12 }
  0x62   : > { %605 = vmatpush1.bf16.msra.mxu1 %v1018_v18 }
  0x63   : > { %452 = vmatpush1.bf16.msra.mxu0 %v438_v15  ;;  %606 = vmatprep.subr.bf16.mxu1 %v1192_v0 }
  0x64   : > { %916 = vmatprep.subr.bf16.mxu0 %v1193_v26 }
  0x66   : > { %887 = vmatmul.mubr.msk.bf16.vlgmr.msra.gmra.mrb[0].mxu0 %vm432_vm1, %v1013_v16  ;;  %607 = vmatpush1.bf16.msra.mxu1 %v1019_v19 }
  0x67   : > { %608 = vmatprep.subr.bf16.mxu1 %v1192_v0  ;;  %917 = vmatpush3.bf16.msra.mxu0 %v1024_v25 }
  0x68   : > { %918 = vmatprep.mubr.msk.bf16.mxu0 %vm1194_vm2, %v1193_v26 }
  0x6a   : > { %609 = vmatpush1.bf16.msra.mxu1 %v1020_v20 }
  0x6b   : > { %610 = vmatprep.subr.bf16.mxu1 %v1192_v0 }
  0x6e   : > { %611 = vmatpush1.bf16.msra.mxu1 %v1021_v21  ;;  %919 = vmatmul.mubr.msk.bf16.vlgmr.msra.gmra.mrb[4].mxu0 %vm648_vm3, %v1027_v28 }
  0x6f   : > { %612 = vmatprep.subr.bf16.mxu1 %v1192_v0 }
  0x72   : > { %613 = vmatpush1.bf16.msra.mxu1 %v1022_v22 }
  0x73   : > { %614 = vmatprep.subr.bf16.mxu1 %v1192_v0 }
  0x76   : > { %615 = vmatpush1.bf16.msra.mxu1 %v1023_v23 }
  0x77   : > { %616 = vmatprep.subr.bf16.mxu1 %v1192_v0 }
  0x7a   : > { %617 = vmatpush1.bf16.msra.mxu1 %v1025_v24 }
  0x7b   : > { %618 = vmatprep.subr.bf16.mxu1 %v1192_v0 }
  0x7e   : > { %619 = vmatpush1.bf16.msra.mxu1 %v1026_v27 }
 0x139   : > { %v477_v36 = vpop.f32.mrb[0].mxu0 }
 0x13a   : > { %v478_v37 = vadd.f32 %v477_v36, %v375_v34  ;;  %v479_v38 = vpop.f32.mrb[1].mxu0 }
 0x13b   : > { %v480_v39 = vadd.f32 %v479_v38, %v379_v35  ;;  %v481_v40 = vpop.f32.mrb[2].mxu0 }
 0x13c   : > { %v482_v41 = vadd.f32 %v481_v40, %v375_v34  ;;  %v483_v42 = vpop.f32.mrb[3].mxu0  ;;  %v486_v44 = vmax.f32 %v478_v37, 0.0 }
 0x13d   : > { %v484_v43 = vadd.f32 %v483_v42, %v379_v35  ;;  %v487_v46 = vmax.f32 %v480_v39, 0.0 }
 0x13e   : > { %v488_v45 = vmax.f32 %v482_v41, 0.0 }
 0x13f   : > { %v489_v47 = vmax.f32 %v484_v43, 0.0 }
 0x140   : > { %v490_v48 = vpack.c.bf16 %v488_v45, %v486_v44 }
 0x141   : > { %v491_v49 = vpack.c.bf16 %v489_v47, %v487_v46  ;;  %v686_v50 = vpop.f32.mrb[4].mxu0 }
 0x142   : > { %v920_v51 = vpop.f32.mrb[5].mxu0 }
 0x143   : > { %900 = vmatprep.mubr.msk.bf16.mxu1 %vm592_vm4, %v491_v49  ;;  %v689_v52 = vpop.f32.mrb[6].mxu0 }
 0x144   : > { %629 = vmatmul.mubr.bf16.vlgmr.msra.gmra.mrb[0].mxu1 %v490_v48  ;;  %v921_v53 = vpop.f32.mrb[7].mxu0 }
 0x217   : > { %v630_v54 = vpop.f32.mrb[0].mxu1 }
 0x218   : > { %v687_v56 = vadd.f32 %v686_v50, %v630_v54  ;;  %v632_v57 = vpop.f32.mrb[1].mxu1  ;;  %707 = sbr.rel (%p1499_p10) target bundleno = 543 (0x21f), region = 60 }
 0x219   : > { %v633_v58 = vpop.f32.mrb[2].mxu1 }
 0x21a   : > { %v700_v59 = vadd.f32 %v904_v55, %v687_v56  ;;  %v690_v60 = vadd.f32 %v689_v52, %v633_v58  ;;  %v635_v61 = vpop.f32.mrb[3].mxu1 }
 0x21c   : > { %702 = vst [vmem:[%s342_s17] sm:$0xff] %v700_v59  ;;  %v701_v62 = vadd.f32 %v904_v55, %v690_v60 }
 0x21e   : > { %703 = vst [vmem:[%s342_s17 + $0x8] sm:$0xff] %v701_v62 }
 0x21f PF: > { %v709_v0 = vadd.f32 %v701_v62, %v700_v59  ;;  %v716_v1 = vmul.f32 %v700_v59, %v700_v59  ;;  %v717_v2 = vmul.f32 %v701_v62, %v701_v62  ;;  %s913_s22 = sshll.u32 %s1266_s9, 8  ;;  %s744_s10 = sshll.u32 %s342_s17, 4  ;;  %s1409_s10 = int_to_ptr.vmem [resolvable:$true] %s744_s10 }
 0x220   : > { %s1407_s26 = scalar_lea.hbm %s1481_s7, %s913_s22  ;;  %s1411_s12 = scalar_lea.sflag [#allocation4], %s340_s14 }
 0x221   : > { %v710_v3 = vrot.slane %v709_v0, 4  ;;  %v718_v4 = vadd.f32 %v717_v2, %v716_v1  ;;  %s1084_s13 = scalar_lea.vmem %s1409_s10, 256  ;;  %p1500_p0 = scmp.ne.s32.totalorder %s1490_s15, 0 }
 0x222   : > { %p1085_p11 = scmp.ne.s32.totalorder %s1409_s10, %s1084_s13  ;;  %s1196_s18 = smov [#allocation7]  }
 0x223   : > { %v711_v5 = vadd.f32 %v710_v3, %v709_v0  ;;  %v719_v6 = vrot.slane %v718_v4, 4  ;;  %s1088_s19 = sshll.u32 %s1196_s18, 4  ;;  %s1089_s19 = int_to_ptr.vmem [resolvable:$false] %s1088_s19 }
 0x224   : > { %p1086_p3 = pnand %p1085_p11, %p1500_p0  ;;  %s1090_s29 = scalar_lea.vmem %s1089_s19, 512 }
 0x225   : > { %p1091_p7 = scmp.lt.s32.totalorder %s1409_s10, %s1089_s19  ;;  %p1092_p8 = scmp.lt.s32.totalorder %s1090_s29, %s1084_s13 }
 0x226   : > { %p1087_p4 = pneg %p1086_p3 }
 0x227   : > { %p1093_p12 = por %p1092_p8, %p1091_p7 }
 0x229   : > { %p1094_p2 = pnand %p1093_p12, %p1087_p4 }
 0x22b   : > { %1097 = shalt.err (!%p1094_p2)
}
 0x22c   : > { %s1098_s14 = scalar_lea.hbm %s1407_s26, 256  ;;  %s1102_s20 = scalar_lea.hbm %s1481_s7, 1024 }
 0x22d   : > { %p1099_p1 = scmp.ne.s32.totalorder %s1407_s26, %s1098_s14  ;;  %p1103_p9 = scmp.lt.u32.totalorder %s1407_s26, %s1481_s7 }
 0x22e   : > { %p1104_p13 = scmp.lt.u32.totalorder %s1102_s20, %s1098_s14  ;;  %p1106_p11 = scmp.lt.u32.totalorder %s1098_s14, %s1407_s26 }
 0x22f   : > { %p1100_p5 = pnand %p1099_p1, %p1500_p0 }
 0x230   : > { %p1105_p10 = por %p1104_p13, %p1103_p9 }
 0x231   : > { %p1101_p6 = pneg %p1100_p5 }
 0x232   : > { %p1107_p3 = por %p1106_p11, %p1105_p10 }
 0x234   : > { %p1108_p4 = pnand %p1107_p3, %p1101_p6 }
 0x236   : > { %1111 = shalt.err (!%p1108_p4)
}
 0x237   : > { %s1197_s24 = smov 128   ;;  %s1198_s25 = smov 8   ;;  %v712_v7 = vrot.slane %v711_v5, 2  ;;  %v720_v8 = vadd.f32 %v719_v6, %v718_v4  ;;  %vm726_vm5 = vcmask 1040384   ;;  %v725_v16 = vld [vmem:[#allocation8] sm:$0x3] }
 0x238   : > { %930 = dma.vmem_to_hbm [thread:$0]  (%p1500_p0), %s1409_s10, 256, %s1407_s26, %s1411_s12, %s1197_s24, %s1197_s24, %s1198_s25  }
 0x239   : > { %v713_v9 = vadd.f32 %v712_v7, %v711_v5  ;;  %v721_v10 = vrot.slane %v720_v8, 2  ;;  %s1199_s13 = smov [#allocation8]   ;;  %p1501_p7 = scmp.eq.s32.totalorder %s1266_s9, 3 }
 0x23a   : > { %s758_s18 = sshll.u32 %s1199_s13, 4  ;;  %s759_s18 = int_to_ptr.vmem [resolvable:$true] %s758_s18 }
 0x23b   : > { %v714_v11 = vrot.slane %v713_v9, 1  ;;  %v722_v12 = vadd.f32 %v721_v10, %v720_v8  ;;  %s1112_s15 = scalar_lea.vmem %s759_s18, 32  ;;  %p1119_p2 = scmp.lt.s32.totalorder %s759_s18, %s759_s18 }
 0x23c   : > { %p1113_p0 = scmp.ne.s32.totalorder %s759_s18, %s1112_s15  ;;  %p1120_p1 = scmp.lt.s32.totalorder %s1112_s15, %s1112_s15 }
 0x23d   : > { %v715_v13 = vadd.f32 %v714_v11, %v713_v9  ;;  %v723_v14 = vrot.slane %v722_v12, 1 }
 0x23e   : > { %p1114_p8 = pnand %p1113_p0, %p1501_p7  ;;  %p1121_p5 = por %p1120_p1, %p1119_p2 }
 0x23f   : > { %v724_v15 = vadd.f32 %v723_v14, %v722_v12 }
 0x240   : > { %p1115_p12 = pneg %p1114_p8 }
 0x241   : > { %v727_v17 = vsel %vm726_vm5, %v715_v13, %v724_v15 }
 0x242   : > { %v728_v18 = vadd.f32 %v727_v17, %v725_v16  ;;  %p1122_p6 = pnand %p1121_p5, %p1115_p12 }
 0x244   : > { %729 = vst [vmem:[#allocation8] sm:$0x3] %v728_v18 }
 0x245   : > { %1125 = shalt.err (!%p1122_p6)
}
 0x246   : > { %s1126_s12 = scalar_lea.hbm %s1482_s8, 32  ;;  %p1502_p13 = pmov %p1501_p7 }
 0x247   : > { %p1127_p9 = scmp.ne.s32.totalorder %s1482_s8, %s1126_s12  ;;  %p1132_p3 = scmp.lt.u32.totalorder %s1126_s12, %s1482_s8 }
 0x249   : > { %p1128_p10 = pnand %p1127_p9, %p1502_p13 }
 0x24b   : > { %p1129_p11 = pneg %p1128_p10 }
 0x24d   : > { %p1134_p4 = pnand %p1132_p3, %p1129_p11 }
 0x24f   : > { %1137 = shalt.err (!%p1134_p4)
}
 0x250   : > { %p1503_p0 = pmov %p1501_p7 }
 0x252   : > { %932 = dma.vmem_to_hbm [thread:$0]  (%p1503_p0), %s759_s18, 32, %s1482_s8, [#allocation9]  }
 0x253   : > { %p1504_p7 = pmov %p1503_p0 }
 0x254   : > { %p1505_p8 = pmov %p1503_p0 }
 0x255   : > { %1163 = dma.done.wait (%p1504_p7), [#allocation9], 32  }
 0x256   : > { %1165 = vsyncadd (%p1505_p8), [#allocation9], 4294967264 }
 0x257 PF: > { %p953_p12 = scmp.ge.s32.totalorder %s1184_s30, 2  ;;  %s774_s17 = sand.u32 1, %s1172_s27  }
 0x258   : > { %p1506_p2 = scmp.ne.s32.totalorder %s1491_s16, 0  ;;  %s775_s22 = scalar_lea.sflag [#allocation4], %s774_s17 }
 0x25a   : > { %p944_p1 = pnand %p953_p12, %p1506_p2 }
 0x25c   : > { %1167 = dma.done.wait (!%p944_p1), %s775_s22, 256  }
 0x25d   : > { %1169 = vsyncadd (!%p944_p1), %s775_s22, 4294967040  ;;  %s1507_s24 = sld [smem:[#allocation14_spill]]  ;;  %s1508_s29 = sld [smem:[#allocation15_spill]] }
 0x25e   : > { %p22_p5 = scmp.ge.s32.totalorder %s1270_s11, 6   ;;  %s1509_s27 = smov %s1176_s28 }
 0x25f   : > { %s1511_s30 = smov %s1270_s11 }
 0x260   :  { %24 = sbr.rel (!%p22_p5) target bundleno = 6 (0x6), region = 107 }
 0x263   : > { %s1510_s28 = smov %s1507_s24 }
 0x267   :  { %780 = vsyncpa [#allocation3], 1 }
 0x268   :  { %782 = vsyncpa [#allocation3 + $0x1], 1 }
 0x269   :  { %783 = vsyncpa [#allocation6], 1 }
 0x26a   :  { %784 = vsyncpa [#allocation4], 1 }
 0x26b   :  { %786 = vsyncpa [#allocation4 + $0x1], 1 }
 0x26c   :  { %787 = vsyncpa [#allocation9], 1 }

</bundles_post_ra>
